<compile_context>
chip_gen: v6e
topology: v6e:2x2x1
jax: 0.10.0
libtpu: 0.0.40
codegen_flags: <defaults>
</compile_context>

<pallas_src>
import functools
import math

import jax
import jax.numpy as jnp
from jax.experimental import pallas as pl
from jax.experimental.pallas import tpu as pltpu

_LANE = 128              # last-dim multiple for lane-dense loads/stores
_BF16_SUBLANE = 16       # bf16 tile is (16, 128): block_m kept a multiple of this
_INV_SQRT2 = 1.0 / math.sqrt(2.0)
_STEP_OVERHEAD_ROWS = 64             # per-grid-step fixed cost, in "equivalent rows"
_BLOCK_M_CANDIDATES = (1024, 512, 256, 128, 64, 32, 16)   # all multiples of 16


def _round_up(n, m):
    return ((n + m - 1) // m) * m


def _pick_block_m(batch):
    """Adaptive batch tile: large tiles for large batches, minimal padding for
    small/ragged ones, and (when the batch is big enough to benefit) a preference
    for grid_m >= 2 so v7x's second TensorCore is not idle."""
    prefer_split = batch >= 256
    best = None
    for bm in _BLOCK_M_CANDIDATES:
        batch_pad = _round_up(batch, bm)
        grid_m = batch_pad // bm
        cost = batch_pad + grid_m * _STEP_OVERHEAD_ROWS
        split_penalty = 1 if (prefer_split and grid_m < 2) else 0
        key = (split_penalty, cost, -bm)
        if best is None or key < best[0]:
            best = (key, bm)
    return best[1]


def _dense_stack_kernel(*refs, n_layers, out_pads, matmul_dtype, approximate_gelu):
    """Fused MLP body. refs = (x, bias_packed, w_0 .. w_{L-1}, out).

    The running activation is chained as a value, so it stays in VMEM/vregs for
    the whole stack.  Matmuls run bf16 x bf16 -> f32 on the MXU; bias add + GELU
    stay f32 on the VPU/EUP; the inter-layer carry is a single bf16 copy.
    """
    x_ref = refs[0]
    b_ref = refs[1]                      # (n_layers, max_out_pad) float32
    w_refs = refs[2:2 + n_layers]        # (in_pad_l, out_pad_l) matmul_dtype
    o_ref = refs[2 + n_layers]

    h = x_ref[...]                       # already matmul_dtype (bf16)
    for layer in range(n_layers):
        out_pad = out_pads[layer]
        y = jnp.dot(h, w_refs[layer][...], preferred_element_type=jnp.float32)
        y = y + b_ref[layer:layer + 1, 0:out_pad]            # f32 bias add (VPU)
        if layer < n_layers - 1:
            if approximate_gelu:
                y = jax.nn.gelu(y, approximate=True)         # tanh -> EUP slot
            else:
                # exact GELU (matches torch.nn.GELU default numerics; VALU-bound)
                y = 0.5 * y * (1.0 + jax.lax.erf(y * _INV_SQRT2))
            h = y.astype(matmul_dtype)   # single bf16 live copy across layers
        else:
            o_ref[...] = y.astype(o_ref.dtype)


class DenseStackPallas:
    """JAX/Pallas equivalent of the PyTorch DenseStack module (fused forward)."""

    def __init__(self, input_size, hidden_size, output_size, key,
                 matmul_dtype=jnp.bfloat16, approximate_gelu=False):
        self.input_size = int(input_size)
        self.output_size = int(output_size)
        self.matmul_dtype = matmul_dtype
        self.approximate_gelu = approximate_gelu

        dims = [int(input_size), *[int(h) for h in hidden_size], int(output_size)]
        self.dims = dims
        self.dims_pad = [_round_up(d, _LANE) for d in dims]
        self.n_layers = len(dims) - 1
        self.out_pads = tuple(self.dims_pad[1:])
        self.num_out_features = dims[-1]

        # Parameters in torch layout (y = x @ W + b): unpadded f32 for reference,
        # lane-padded bf16 weights + one packed f32 bias slab for the kernel.
        self.params = []
        weights_padded = []
        max_out_pad = max(self.dims_pad[1:])
        bias_packed = jnp.zeros((self.n_layers, max_out_pad), jnp.float32)
        for l in range(self.n_layers):
            in_f, out_f = dims[l], dims[l + 1]
            in_p, out_p = self.dims_pad[l], self.dims_pad[l + 1]
            key, kw, kb = jax.random.split(key, 3)
            bound = 1.0 / math.sqrt(in_f)   # torch.nn.Linear default init
            w = jax.random.uniform(kw, (in_f, out_f), jnp.float32, -bound, bound)
            b = jax.random.uniform(kb, (1, out_f), jnp.float32, -bound, bound)
            self.params.append((w, b))
            # zero-padded lanes stay exactly 0 through bias + GELU
            w_p = jnp.zeros((in_p, out_p), jnp.float32).at[:in_f, :out_f].set(w)
            weights_padded.append(w_p.astype(matmul_dtype))
            bias_packed = bias_packed.at[l, :out_f].set(b[0])
        self.weights_padded = tuple(weights_padded)
        self.bias_packed = bias_packed

        # Per-generation VMEM budget: ~75% of physical capacity
        # (~48 MiB on v7x's 64 MiB, ~96 MiB on 128-MiB v5e/v6e).
        try:
            vmem_cap = int(pltpu.get_tpu_info().vmem_capacity_bytes)
        except Exception:
            vmem_cap = 64 * 2**20   # conservative (v7x) if the query is unavailable
        self._vmem_budget = (vmem_cap * 3) // 4
        # TODO(synk): if the resident weight set ever exceeds this budget, stream
        # weights layer-by-layer with K/N-tiled BlockSpecs instead of keeping the
        # whole stack VMEM-resident.

        self._use_single_buffer = True
        # jit fuses the zero-pad, the fused kernel and the final slice into one
        # executable; params are passed as arguments, not baked-in constants.
        self._jit_forward = jax.jit(self._forward)

    def _const_spec(self, shape):
        # Weight/bias blocks never change across the grid; single-buffer them so
        # they are not double-allocated in VMEM (critical on v7x's 64 MiB VMEM).
        if self._use_single_buffer:
            return pl.BlockSpec(shape, lambda i: (0, 0),
                                pipeline_mode=pl.Buffered(buffer_count=1))
        return pl.BlockSpec(shape, lambda i: (0, 0))

    def _forward(self, x, weights, bias_packed):
        batch = x.shape[0]
        in_pad = self.dims_pad[0]
        out_pad = self.dims_pad[-1]
        out_dtype = x.dtype

        block_m = _pick_block_m(batch)
        batch_pad = _round_up(batch, block_m)
        grid_m = batch_pad // block_m

        # Padded input slab built directly in the matmul dtype (bf16): halves the
        # x HBM->VMEM bytes; padded rows/lanes are exactly zero.
        x_p = jnp.zeros((batch_pad, in_pad), self.matmul_dtype)
        x_p = x_p.at[:batch, :self.input_size].set(x.astype(self.matmul_dtype))

        in_specs = [pl.BlockSpec((block_m, in_pad), lambda i: (i, 0)),
                    self._const_spec(bias_packed.shape)]
        for w in weights:
            in_specs.append(self._const_spec(w.shape))
        out_spec = pl.BlockSpec((block_m, out_pad), lambda i: (i, 0))

        # VMEM budget: resident (single-buffered) params + double-buffered IO tiles
        # + f32 intermediates, with slack, clamped to the per-generation cap.
        param_bytes = sum(int(w.size) * w.dtype.itemsize for w in weights)
        param_bytes += int(bias_packed.size) * bias_packed.dtype.itemsize
        io_bytes = block_m * (in_pad * jnp.dtype(self.matmul_dtype).itemsize
                              + out_pad * jnp.dtype(out_dtype).itemsize)
        act_bytes = 2 * block_m * max(self.dims_pad) * 4
        working = param_bytes + 2 * io_bytes + act_bytes
        vmem_limit = int(min(max(2 * working, 32 * 2**20), self._vmem_budget))

        kernel = functools.partial(
            _dense_stack_kernel,
            n_layers=self.n_layers,
            out_pads=self.out_pads,
            matmul_dtype=self.matmul_dtype,
            approximate_gelu=self.approximate_gelu,
        )
        out_p = pl.pallas_call(
            kernel,
            out_shape=jax.ShapeDtypeStruct((batch_pad, out_pad), out_dtype),
            grid=(grid_m,),
            in_specs=in_specs,
            out_specs=out_spec,
            compiler_params=pltpu.CompilerParams(
                dimension_semantics=("parallel",),   # batch rows split across TCs
                vmem_limit_bytes=vmem_limit,
            ),
        )(x_p, bias_packed, *weights)
        return out_p[:batch, :self.output_size]

    def __call__(self, x):
        try:
            return self._jit_forward(x, self.weights_padded, self.bias_packed)
        except Exception:
            if self._use_single_buffer:
                # Fallback if this JAX build rejects pl.Buffered(1) on constant specs.
                self._use_single_buffer = False
                self._jit_forward = jax.jit(self._forward)
                return self._jit_forward(x, self.weights_padded, self.bias_packed)
            raise


def _reference_forward(x, params, matmul_cast=None):
    """Plain-JAX reference. matmul_cast=bf16 mirrors the kernel's MXU numerics."""
    h = x
    n = len(params)
    for i, (w, b) in enumerate(params):
        if matmul_cast is not None:
            h = jnp.dot(h.astype(matmul_cast), w.astype(matmul_cast),
                        preferred_element_type=jnp.float32) + b
        else:
            h = h @ w + b
        if i < n - 1:
            h = jax.nn.gelu(h, approximate=False)
    return h


if __name__ == "__main__":
    key = jax.random.PRNGKey(0)
    key, k_in = jax.random.split(key)

    batch = 8
    input_size = 32
    hidden_size = [64, 48]
    output_size = 16

    model = DenseStackPallas(input_size, hidden_size, output_size, key)
    x = jax.random.normal(k_in, (batch, input_size), jnp.float32)

    out = jax.block_until_ready(model(x))
    assert out.shape == (batch, output_size)

    # Tight check vs a reference that mirrors the kernel's bf16-MXU / f32-acc math.
    ref_bf16 = _reference_forward(x, model.params, matmul_cast=jnp.bfloat16)
    assert jnp.allclose(out, ref_bf16, atol=2e-2, rtol=2e-2), "mismatch vs bf16-matmul reference"

    # Looser sanity check vs the exact-f32 torch-equivalent forward.
    ref_f32 = _reference_forward(x, model.params)
    assert jnp.allclose(out, ref_f32, atol=1e-1, rtol=1e-1), "mismatch vs f32 reference"

    print("KERNEL_OK")
</pallas_src>

<mosaic_0001>
module attributes {stable_mosaic.version = 11 : i64} {
  func.func @_dense_stack_kernel(%arg0: i32, %arg1: memref<16x128xbf16, #tpu.memory_space<vmem>>, %arg2: memref<3x128xf32, #tpu.memory_space<vmem>>, %arg3: memref<128x128xbf16, #tpu.memory_space<vmem>>, %arg4: memref<128x128xbf16, #tpu.memory_space<vmem>>, %arg5: memref<128x128xbf16, #tpu.memory_space<vmem>>, %arg6: memref<16x128xf32, #tpu.memory_space<vmem>>) attributes {dimension_semantics = [#tpu.dimension_semantics<parallel>], iteration_bounds = array<i64: 1>, scalar_prefetch = 0 : i64, scratch_operands = 0 : i64, tpu.core_type = #tpu.core_type<tc>, window_params = [{transform_indices = @transform_0, window_bounds = array<i64: 16, 128>}, {pipeline_mode = #tpu.pipeline_mode<synchronous>, transform_indices = @transform_1, window_bounds = array<i64: 3, 128>}, {pipeline_mode = #tpu.pipeline_mode<synchronous>, transform_indices = @transform_2, window_bounds = array<i64: 128, 128>}, {pipeline_mode = #tpu.pipeline_mode<synchronous>, transform_indices = @transform_3, window_bounds = array<i64: 128, 128>}, {pipeline_mode = #tpu.pipeline_mode<synchronous>, transform_indices = @transform_4, window_bounds = array<i64: 128, 128>}, {transform_indices = @transform_5, window_bounds = array<i64: 16, 128>}]} {
    %c0 = arith.constant 0 : index
    %c0_0 = arith.constant 0 : index
    %0 = vector.load %arg1[%c0, %c0_0] : memref<16x128xbf16, #tpu.memory_space<vmem>>, vector<16x128xbf16>
    %c0_1 = arith.constant 0 : index
    %c0_2 = arith.constant 0 : index
    %1 = vector.load %arg3[%c0_1, %c0_2] : memref<128x128xbf16, #tpu.memory_space<vmem>>, vector<128x128xbf16>
    %cst = arith.constant dense<0.000000e+00> : vector<16x128xf32>
    %2 = tpu.matmul %0, %1, %cst {dimension_numbers = #tpu.dot_dimension_numbers<[1], [0], [0], [1], [0, 0, 1, 1], [], []>} : vector<16x128xbf16>, vector<128x128xbf16>, vector<16x128xf32> -> vector<16x128xf32>
    %c0_3 = arith.constant 0 : index
    %c0_4 = arith.constant 0 : index
    %3 = vector.load %arg2[%c0_3, %c0_4] : memref<3x128xf32, #tpu.memory_space<vmem>>, vector<1x128xf32>
    %4 = vector.broadcast %3 : vector<1x128xf32> to vector<16x128xf32>
    %5 = arith.addf %2, %4 : vector<16x128xf32>
    %cst_5 = arith.constant 5.000000e-01 : f32
    %6 = vector.broadcast %cst_5 : f32 to vector<16x128xf32>
    %7 = arith.mulf %6, %5 : vector<16x128xf32>
    %cst_6 = arith.constant 0.707106769 : f32
    %8 = vector.broadcast %cst_6 : f32 to vector<16x128xf32>
    %9 = arith.mulf %5, %8 : vector<16x128xf32>
    %10 = math.erf %9 : vector<16x128xf32>
    %cst_7 = arith.constant 1.000000e+00 : f32
    %11 = vector.broadcast %cst_7 : f32 to vector<16x128xf32>
    %12 = arith.addf %11, %10 : vector<16x128xf32>
    %13 = arith.mulf %7, %12 : vector<16x128xf32>
    %14 = arith.truncf %13 : vector<16x128xf32> to vector<16x128xbf16>
    %c0_8 = arith.constant 0 : index
    %c0_9 = arith.constant 0 : index
    %15 = vector.load %arg4[%c0_8, %c0_9] : memref<128x128xbf16, #tpu.memory_space<vmem>>, vector<128x128xbf16>
    %cst_10 = arith.constant dense<0.000000e+00> : vector<16x128xf32>
    %16 = tpu.matmul %14, %15, %cst_10 {dimension_numbers = #tpu.dot_dimension_numbers<[1], [0], [0], [1], [0, 0, 1, 1], [], []>} : vector<16x128xbf16>, vector<128x128xbf16>, vector<16x128xf32> -> vector<16x128xf32>
    %c1 = arith.constant 1 : index
    %c0_11 = arith.constant 0 : index
    %17 = vector.load %arg2[%c1, %c0_11] : memref<3x128xf32, #tpu.memory_space<vmem>>, vector<1x128xf32>
    %18 = vector.broadcast %17 : vector<1x128xf32> to vector<16x128xf32>
    %19 = arith.addf %16, %18 : vector<16x128xf32>
    %cst_12 = arith.constant 5.000000e-01 : f32
    %20 = vector.broadcast %cst_12 : f32 to vector<16x128xf32>
    %21 = arith.mulf %20, %19 : vector<16x128xf32>
    %cst_13 = arith.constant 0.707106769 : f32
    %22 = vector.broadcast %cst_13 : f32 to vector<16x128xf32>
    %23 = arith.mulf %19, %22 : vector<16x128xf32>
    %24 = math.erf %23 : vector<16x128xf32>
    %cst_14 = arith.constant 1.000000e+00 : f32
    %25 = vector.broadcast %cst_14 : f32 to vector<16x128xf32>
    %26 = arith.addf %25, %24 : vector<16x128xf32>
    %27 = arith.mulf %21, %26 : vector<16x128xf32>
    %28 = arith.truncf %27 : vector<16x128xf32> to vector<16x128xbf16>
    %c0_15 = arith.constant 0 : index
    %c0_16 = arith.constant 0 : index
    %29 = vector.load %arg5[%c0_15, %c0_16] : memref<128x128xbf16, #tpu.memory_space<vmem>>, vector<128x128xbf16>
    %cst_17 = arith.constant dense<0.000000e+00> : vector<16x128xf32>
    %30 = tpu.matmul %28, %29, %cst_17 {dimension_numbers = #tpu.dot_dimension_numbers<[1], [0], [0], [1], [0, 0, 1, 1], [], []>} : vector<16x128xbf16>, vector<128x128xbf16>, vector<16x128xf32> -> vector<16x128xf32>
    %c2 = arith.constant 2 : index
    %c0_18 = arith.constant 0 : index
    %31 = vector.load %arg2[%c2, %c0_18] : memref<3x128xf32, #tpu.memory_space<vmem>>, vector<1x128xf32>
    %32 = vector.broadcast %31 : vector<1x128xf32> to vector<16x128xf32>
    %33 = arith.addf %30, %32 : vector<16x128xf32>
    %c0_19 = arith.constant 0 : index
    %c0_20 = arith.constant 0 : index
    %34 = vector.load %arg6[%c0_19, %c0_20] : memref<16x128xf32, #tpu.memory_space<vmem>>, vector<16x128xf32>
    tpu.vector_store %arg6[%c0_19, %c0_20], %33 {strides = array<i32>} : memref<16x128xf32, #tpu.memory_space<vmem>>, vector<16x128xf32>,
    return
  }
  func.func @transform_0(%arg0: i32) -> (i32, i32) {
    %c0_i32 = arith.constant 0 : i32
    %c0_i32_0 = arith.constant 0 : i32
    return %arg0, %c0_i32 : i32, i32
  }
  func.func @transform_1(%arg0: i32) -> (i32, i32) {
    %c0_i32 = arith.constant 0 : i32
    %c0_i32_0 = arith.constant 0 : i32
    %c0_i32_1 = arith.constant 0 : i32
    return %c0_i32, %c0_i32_0 : i32, i32
  }
  func.func @transform_2(%arg0: i32) -> (i32, i32) {
    %c0_i32 = arith.constant 0 : i32
    %c0_i32_0 = arith.constant 0 : i32
    %c0_i32_1 = arith.constant 0 : i32
    return %c0_i32, %c0_i32_0 : i32, i32
  }
  func.func @transform_3(%arg0: i32) -> (i32, i32) {
    %c0_i32 = arith.constant 0 : i32
    %c0_i32_0 = arith.constant 0 : i32
    %c0_i32_1 = arith.constant 0 : i32
    return %c0_i32, %c0_i32_0 : i32, i32
  }
  func.func @transform_4(%arg0: i32) -> (i32, i32) {
    %c0_i32 = arith.constant 0 : i32
    %c0_i32_0 = arith.constant 0 : i32
    %c0_i32_1 = arith.constant 0 : i32
    return %c0_i32, %c0_i32_0 : i32, i32
  }
  func.func @transform_5(%arg0: i32) -> (i32, i32) {
    %c0_i32 = arith.constant 0 : i32
    %c0_i32_0 = arith.constant 0 : i32
    return %arg0, %c0_i32 : i32, i32
  }
}

</mosaic_0001>

<bundles_post_ra>
// kernel: _forward.1
= control target key start
LH: loop header
LB: loop body
LE: loop exit
PB: predicated region body
PF: predicated region fallthrough
CT: control target
= control target key end

     0   :  { %10 = vsyncpa [#allocation3], 0  ;;  %s743_s0 = inlined_call_operand.vmem [shape: bf16[16,128], index: 0, kind: input, shape index: {}]   ;;  %s744_s1 = inlined_call_operand.vmem [shape: f32[3,128], index: 1, kind: input, shape index: {}]   ;;  %s745_s2 = inlined_call_operand.hbm [shape: bf16[128,128], index: 2, kind: input, shape index: {}]   ;;  %s746_s3 = inlined_call_operand.hbm [shape: bf16[128,128], index: 3, kind: input, shape index: {}]   ;;  %s747_s4 = inlined_call_operand.hbm [shape: bf16[128,128], index: 4, kind: input, shape index: {}]   ;;  %s748_s5 = inlined_call_operand.vmem [shape: f32[16,128], index: 5, kind: output, shape index: {}]  }
   0x1   :  { %11 = vsyncpa [#allocation5], 0  ;;  %s649_s18 = smov [#allocation4]   ;;  %s650_s20 = smov [#allocation2]  }
   0x2   :  { %s33_s19 = sshll.u32 %s649_s18, 4  ;;  %s21_s21 = sshll.u32 %s650_s20, 4  ;;  %s34_s19 = int_to_ptr.vmem [resolvable:$true] %s33_s19  ;;  %s22_s21 = int_to_ptr.vmem [resolvable:$true] %s21_s21 }
   0x3   :  { %s593_s22 = scalar_lea.vmem %s34_s19, 1024  ;;  %p598_p1 = scmp.lt.s32.totalorder %s34_s19, %s34_s19 }
   0x4   :  { %p594_p0 = scmp.ne.s32.totalorder %s34_s19, %s593_s22  ;;  %p599_p2 = scmp.lt.s32.totalorder %s593_s22, %s593_s22 }
   0x6   :  { %p600_p3 = por %p599_p2, %p598_p1 }
   0x8   :  { %p601_p4 = pnand %p600_p3, %p594_p0 }
   0xa   :  { %604 = shalt.err (!%p601_p4)
}
   0xb   :  { %s651_s23 = smov 64   ;;  %s652_s24 = smov 4  }
   0xc   :  { %39 = dma.hbm_to_vmem [thread:$0]  %s746_s3, 1024, %s34_s19, [#allocation5], %s651_s23, %s651_s23, %s652_s24  }
   0xd   :  { %s613_s27 = scalar_lea.vmem %s22_s21, 1024  ;;  %p618_p6 = scmp.lt.s32.totalorder %s22_s21, %s22_s21 }
   0xe   :  { %p614_p5 = scmp.ne.s32.totalorder %s22_s21, %s613_s27  ;;  %p619_p7 = scmp.lt.s32.totalorder %s613_s27, %s613_s27 }
  0x10   :  { %p620_p8 = por %p619_p7, %p618_p6 }
  0x12   :  { %p621_p9 = pnand %p620_p8, %p614_p5 }
  0x14   :  { %624 = shalt.err (!%p621_p9)
}
  0x15   :  { %27 = dma.hbm_to_vmem [thread:$0]  %s745_s2, 1024, %s22_s21, [#allocation3], %s651_s23, %s651_s23, %s652_s24  }
  0x16   :  { %s653_s30 = smov [#allocation6]  }
  0x17   :  { %s45_s6 = sshll.u32 %s653_s30, 4  ;;  %s46_s6 = int_to_ptr.vmem [resolvable:$true] %s45_s6 }
  0x18   :  { %s633_s7 = scalar_lea.vmem %s46_s6, 1024  ;;  %p638_p11 = scmp.lt.s32.totalorder %s46_s6, %s46_s6 }
  0x19   :  { %p634_p10 = scmp.ne.s32.totalorder %s46_s6, %s633_s7  ;;  %p639_p12 = scmp.lt.s32.totalorder %s633_s7, %s633_s7 }
  0x1b   :  { %p640_p13 = por %p639_p12, %p638_p11 }
  0x1d   :  { %p641_p0 = pnand %p640_p13, %p634_p10 }
  0x1f   :  { %644 = shalt.err (!%p641_p0)
}
  0x20   :  { %51 = dma.hbm_to_vmem [thread:$0]  %s747_s4, 1024, %s46_s6, [#allocation5], %s651_s23, %s651_s23, %s652_s24  }
  0x21   :  { %645 = dma.done.wait [#allocation3], 1024  }
  0x22   :  { %646 = vsyncadd [#allocation3], 4294966272 }
  0x23   :  { %647 = dma.done.wait [#allocation5], 2048  }
  0x24   :  { %648 = vsyncadd [#allocation5], 4294965248  ;;  %v654_v0 = vmov 0.0   ;;  %vm655_vm0 = vmmov 0   ;;  %v552_v1 = vld [vmem:[#allocation2 + $0x38] sm:$0xff]   ;;  %v553_v2 = vld [vmem:[#allocation2 + $0x30] sm:$0xff]  }
  0x25   :  { %485 = vmatprep.subr.bf16.mxu0 %v654_v0  ;;  %501 = vmatprep.mubr.msk.bf16.mxu0 %vm655_vm0, %v654_v0  ;;  %v554_v3 = vld [vmem:[#allocation2 + $0x28] sm:$0xff]   ;;  %v561_v4 = vld [vmem:[#allocation4 + $0x38] sm:$0xff]   ;;  %v555_v5 = vld [vmem:[#allocation2 + $0x20] sm:$0xff]  }
  0x26   :  { %505 = vmatprep.subr.bf16.mxu1 %v654_v0  ;;  %521 = vmatprep.mubr.msk.bf16.mxu1 %vm655_vm0, %v654_v0  ;;  %v556_v6 = vld [vmem:[#allocation2 + $0x18] sm:$0xff]   ;;  %v557_v7 = vld [vmem:[#allocation2 + $0x10] sm:$0xff]   ;;  %v558_v8 = vld [vmem:[#allocation2 + $0x8] sm:$0xff]  }
  0x27   :  { %486 = vmatpush3.bf16.msra.mxu0 %v552_v1  ;;  %506 = vmatpush3.bf16.msra.mxu1 %v561_v4  ;;  %v559_v9 = vld [vmem:[#allocation2] sm:$0xff]   ;;  %v562_v11 = vld [vmem:[#allocation4 + $0x30] sm:$0xff]   ;;  %v563_v12 = vld [vmem:[#allocation4 + $0x28] sm:$0xff]  }
  0x28   :  { %487 = vmatprep.subr.bf16.mxu0 %v654_v0  ;;  %507 = vmatprep.subr.bf16.mxu1 %v654_v0  ;;  %v560_v10 = vld [vmem:[%s743_s0] sm:$0xff]   ;;  %v565_v14 = vld [vmem:[#allocation4 + $0x18] sm:$0xff]   ;;  %v566_v15 = vld [vmem:[#allocation4 + $0x10] sm:$0xff]  }
  0x29   :  { %v564_v13 = vld [vmem:[#allocation4 + $0x20] sm:$0xff]   ;;  %v567_v16 = vld [vmem:[#allocation4 + $0x8] sm:$0xff]   ;;  %v569_v18 = vld [vmem:[#allocation6 + $0x38] sm:$0xff]  }
  0x2a   :  { %v568_v17 = vld [vmem:[#allocation4] sm:$0xff]   ;;  %v570_v37 = vld [vmem:[#allocation6 + $0x30] sm:$0xff]   ;;  %v571_v38 = vld [vmem:[#allocation6 + $0x28] sm:$0xff]  }
  0x2b   :  { %488 = vmatpush3.bf16.msra.mxu0 %v553_v2  ;;  %508 = vmatpush3.bf16.msra.mxu1 %v562_v11  ;;  %v430_v19 = vld [vmem:[%s744_s1] ss:$0 sm:$0xff]  ;;  %v573_v40 = vld [vmem:[#allocation6 + $0x18] sm:$0xff]   ;;  %v574_v41 = vld [vmem:[#allocation6 + $0x10] sm:$0xff]  }
  0x2c   :  { %489 = vmatprep.subr.bf16.mxu0 %v654_v0  ;;  %509 = vmatprep.subr.bf16.mxu1 %v654_v0  ;;  %v572_v39 = vld [vmem:[#allocation6 + $0x20] sm:$0xff]   ;;  %v575_v42 = vld [vmem:[#allocation6 + $0x8] sm:$0xff]  }
  0x2d   :  { %v576_v43 = vld [vmem:[#allocation6] sm:$0xff]  }
  0x2e   :  { %v440_v44 = vld [vmem:[%s744_s1 + $0x1] ss:$0 sm:$0xff]  ;;  %v449_v62 = vld [vmem:[%s744_s1 + $0x2] ss:$0 sm:$0xff] }
  0x2f   :  { %490 = vmatpush3.bf16.msra.mxu0 %v554_v3  ;;  %510 = vmatpush3.bf16.msra.mxu1 %v563_v12 }
  0x30   :  { %491 = vmatprep.subr.bf16.mxu0 %v654_v0  ;;  %511 = vmatprep.subr.bf16.mxu1 %v654_v0 }
  0x33   :  { %492 = vmatpush3.bf16.msra.mxu0 %v555_v5  ;;  %512 = vmatpush3.bf16.msra.mxu1 %v564_v13 }
  0x34   :  { %493 = vmatprep.subr.bf16.mxu0 %v654_v0  ;;  %513 = vmatprep.subr.bf16.mxu1 %v654_v0 }
  0x37   :  { %494 = vmatpush3.bf16.msra.mxu0 %v556_v6  ;;  %514 = vmatpush3.bf16.msra.mxu1 %v565_v14 }
  0x38   :  { %495 = vmatprep.subr.bf16.mxu0 %v654_v0  ;;  %515 = vmatprep.subr.bf16.mxu1 %v654_v0 }
  0x3b   :  { %496 = vmatpush3.bf16.msra.mxu0 %v557_v7  ;;  %516 = vmatpush3.bf16.msra.mxu1 %v566_v15 }
  0x3c   :  { %497 = vmatprep.subr.bf16.mxu0 %v654_v0  ;;  %517 = vmatprep.subr.bf16.mxu1 %v654_v0 }
  0x3f   :  { %498 = vmatpush3.bf16.msra.mxu0 %v558_v8  ;;  %518 = vmatpush3.bf16.msra.mxu1 %v567_v16 }
  0x40   :  { %499 = vmatprep.subr.bf16.mxu0 %v654_v0  ;;  %519 = vmatprep.subr.bf16.mxu1 %v654_v0 }
  0x43   :  { %500 = vmatpush3.bf16.msra.mxu0 %v559_v9  ;;  %520 = vmatpush3.bf16.msra.mxu1 %v568_v17 }
  0x44   :  { %525 = vmatprep.subr.bf16.mxu0 %v654_v0 }
  0x46   :  { %502 = vmatmul.mubr.bf16.vlgmr.msra.gmra.mxu0 %v560_v10 }
  0x47   :  { %541 = vmatprep.mubr.msk.bf16.mxu0 %vm655_vm0, %v654_v0  ;;  %526 = vmatpush3.bf16.msra.mxu0 %v569_v18 }
  0x48   :  { %527 = vmatprep.subr.bf16.mxu0 %v654_v0 }
  0x4b   :  { %528 = vmatpush3.bf16.msra.mxu0 %v570_v37 }
  0x4c   :  { %529 = vmatprep.subr.bf16.mxu0 %v654_v0 }
  0x4f   :  { %530 = vmatpush3.bf16.msra.mxu0 %v571_v38 }
  0x50   :  { %531 = vmatprep.subr.bf16.mxu0 %v654_v0 }
  0x53   :  { %532 = vmatpush3.bf16.msra.mxu0 %v572_v39 }
  0x54   :  { %533 = vmatprep.subr.bf16.mxu0 %v654_v0 }
  0x57   :  { %534 = vmatpush3.bf16.msra.mxu0 %v573_v40 }
  0x58   :  { %535 = vmatprep.subr.bf16.mxu0 %v654_v0 }
  0x5b   :  { %536 = vmatpush3.bf16.msra.mxu0 %v574_v41 }
  0x5c   :  { %537 = vmatprep.subr.bf16.mxu0 %v654_v0 }
  0x5f   :  { %538 = vmatpush3.bf16.msra.mxu0 %v575_v42 }
  0x60   :  { %539 = vmatprep.subr.bf16.mxu0 %v654_v0 }
  0x63   :  { %540 = vmatpush3.bf16.msra.mxu0 %v576_v43 }
 0x106   :  { %v173_v20 = vpop.f32.mrf.mxu0 }
 0x107   :  { %v174_v21 = vadd.f32 %v430_v19, %v173_v20 }
 0x108   :  { %v503_v22 = vpop.f32.mrf.mxu0 }
 0x109   :  { %v182_v23 = vmul.f32 0.70710677, %v174_v21  ;;  %v180_v31 = vmul.f32 0.5, %v174_v21 }
 0x10a   :  { %v176_v24 = vpop.f32.mrf.mxu0 }
 0x10b   :  { %577 = verf.f32 %v182_v23  ;;  %v177_v25 = vadd.f32 %v430_v19, %v176_v24 }
 0x10c   :  { %v504_v26 = vpop.f32.mrf.mxu0 }
 0x10d   :  { %v183_v27 = vmul.f32 0.70710677, %v177_v25  ;;  %v181_v32 = vmul.f32 0.5, %v177_v25 }
 0x10f   :  { %579 = verf.f32 %v183_v27 }
 0x118   :  { %v578_v28 = vpop.eup %577 }
 0x119   :  { %v186_v29 = vadd.f32 1.0, %v578_v28 }
 0x11b   :  { %v188_v34 = vmul.f32 %v186_v29, %v180_v31 }
 0x11c   :  { %v580_v30 = vpop.eup %579 }
 0x11d   :  { %v187_v33 = vadd.f32 1.0, %v580_v30 }
 0x11f   :  { %v189_v35 = vmul.f32 %v187_v33, %v181_v32 }
 0x121   :  { %v190_v36 = vpack.c.bf16 %v189_v35, %v188_v34 }
 0x123   :  { %522 = vmatmul.mubr.bf16.vlgmr.msra.gmra.mxu1 %v190_v36 }
 0x1e3   :  { %v294_v45 = vpop.f32.mrf.mxu1 }
 0x1e4   :  { %v295_v46 = vadd.f32 %v440_v44, %v294_v45 }
 0x1e5   :  { %v523_v47 = vpop.f32.mrf.mxu1 }
 0x1e6   :  { %v303_v48 = vmul.f32 0.70710677, %v295_v46  ;;  %v301_v56 = vmul.f32 0.5, %v295_v46 }
 0x1e7   :  { %v297_v49 = vpop.f32.mrf.mxu1 }
 0x1e8   :  { %581 = verf.f32 %v303_v48  ;;  %v298_v50 = vadd.f32 %v440_v44, %v297_v49 }
 0x1e9   :  { %v524_v51 = vpop.f32.mrf.mxu1 }
 0x1ea   :  { %v304_v52 = vmul.f32 0.70710677, %v298_v50  ;;  %v302_v57 = vmul.f32 0.5, %v298_v50 }
 0x1ec   :  { %583 = verf.f32 %v304_v52 }
 0x1f5   :  { %v582_v53 = vpop.eup %581 }
 0x1f6   :  { %v307_v54 = vadd.f32 1.0, %v582_v53 }
 0x1f8   :  { %v309_v59 = vmul.f32 %v307_v54, %v301_v56 }
 0x1f9   :  { %v584_v55 = vpop.eup %583 }
 0x1fa   :  { %v308_v58 = vadd.f32 1.0, %v584_v55 }
 0x1fc   :  { %v310_v60 = vmul.f32 %v308_v58, %v302_v57 }
 0x1fe   :  { %v311_v61 = vpack.c.bf16 %v310_v60, %v309_v59 }
 0x200   :  { %542 = vmatmul.mubr.bf16.vlgmr.msra.gmra.mxu0 %v311_v61 }
 0x2c0   :  { %v415_v63 = vpop.f32.mrf.mxu0 }
 0x2c1   :  { %v416_v0 = vadd.f32 %v449_v62, %v415_v63 }
 0x2c2   :  { %v543_v1 = vpop.f32.mrf.mxu0 }
 0x2c3   :  { %422 = vst [vmem:[%s748_s5] sm:$0xff] %v416_v0 }
 0x2c4   :  { %v418_v2 = vpop.f32.mrf.mxu0 }
 0x2c5   :  { %v419_v3 = vadd.f32 %v449_v62, %v418_v2 }
 0x2c6   :  { %v544_v4 = vpop.f32.mrf.mxu0 }
 0x2c7   :  { %423 = vst [vmem:[%s748_s5 + $0x8] sm:$0xff] %v419_v3 }
 0x2c8   :  { %428 = vsyncpa [#allocation3], 1 }
 0x2c9   :  { %429 = vsyncpa [#allocation5], 1 }

</bundles_post_ra>
